<compile_context>
chip_gen: v5e
topology: v5e:2x2
jax: 0.10.0
libtpu: 0.0.40
codegen_flags: <defaults>
</compile_context>

<pallas_src>
import jax
import jax.numpy as jnp
from jax.experimental import pallas as pl
from jax.experimental.pallas import tpu as pltpu


# ---------------------------------------------------------------------------
# Kernels
# ---------------------------------------------------------------------------
def ca_gate_kernel(down_ref, w1_ref, b1_ref, w2_ref, b2_ref, g_ref):
    """Per-batch channel gate: sigmoid(conv2(relu(conv1(GAP(down))))).

    down_ref : (1, Sd, Cd)   flattened-spatial down features (f32)
    w1_ref   : (Cd, C)       conv1 weight
    b1_ref   : (1, C)        conv1 bias
    w2_ref   : (C, C)        conv2 weight
    b2_ref   : (1, C)        conv2 bias
    g_ref    : (1, 1, C)     output gate
    """
    d = down_ref[0]                                         # (Sd, Cd) f32
    pooled = jnp.mean(d, axis=0, keepdims=True)             # (1, Cd)  global avg pool
    # Pad M to a full sublane tile (8) so the tiny matmuls lower to clean MXU ops;
    # all rows are identical, row 0 is the answer.
    pooled8 = jnp.broadcast_to(pooled, (8, pooled.shape[1]))

    g1 = jnp.dot(pooled8, w1_ref[...], preferred_element_type=jnp.float32)
    g1 = jnp.maximum(g1 + b1_ref[...], 0.0)                 # relu(conv1)
    g2 = jnp.dot(g1, w2_ref[...], preferred_element_type=jnp.float32)
    g2 = g2 + b2_ref[...]
    gate = 1.0 / (1.0 + jnp.exp(-g2))                       # sigmoid (EUP exp)
    g_ref[0] = gate[0:1]                                    # (1, C)


def ca_left_kernel(left_ref, w0_ref, b0_ref, gate_ref, o_ref):
    """Row-tile of the left path: relu(x @ W0_folded + b0) * gate.

    left_ref : (1, TR, Cl)  bf16 activations (TR rows of the flattened H*W axis)
    w0_ref   : (Cl, C)      bf16 conv0 weight with bn0 scale folded in
    b0_ref   : (1, C)       f32 folded conv0+bn0 bias
    gate_ref : (1, 1, C)    f32 per-batch channel gate
    o_ref    : (1, TR, C)   f32 output rows
    """
    x = left_ref[0]                                          # (TR, Cl) bf16
    h = jnp.dot(x, w0_ref[...], preferred_element_type=jnp.float32)  # MXU, f32 acc
    h = jnp.maximum(h + b0_ref[...], 0.0)                    # bn0-folded bias + relu
    o_ref[0] = (h * gate_ref[0]).astype(o_ref.dtype)         # channel gate, lane-dense store


# ---------------------------------------------------------------------------
# Wrapper
# ---------------------------------------------------------------------------
def _pick_row_tile(total, max_rows=1024):
    """Largest row-tile <= max_rows that divides `total` (multiple of 8 when tiled)."""
    if total <= max_rows:
        return total
    start = max_rows - (max_rows % 8)
    for t in range(start, 7, -8):
        if total % t == 0:
            return t
    return total


def ca_forward(left_nchw, down_nchw, params, eps=1e-5, max_rows=1024):
    """left_nchw: (N, Cl, H, W); down_nchw: (N, Cd, Hd, Wd); params: PyTorch-shaped tensors."""
    N, Cl, H, W = left_nchw.shape
    Nd, Cd, Hd, Wd = down_nchw.shape
    assert Nd == N
    C = params["w0"].shape[0]                                # 256

    # ---- fold bn0 into conv0 (host-side constant fold) ----
    gamma, beta, mean, var = params["bn0"]
    scale = gamma / jnp.sqrt(var + eps)                      # (C,)
    w0 = params["w0"][:, :, 0, 0]                            # (C, Cl)
    w0_eff = jnp.transpose(w0 * scale[:, None])              # (Cl, C), bn scale folded
    b0_eff = scale * (params["b0"] - mean) + beta            # (C,)

    w1 = jnp.transpose(params["w1"][:, :, 0, 0])             # (Cd, C)
    w2 = jnp.transpose(params["w2"][:, :, 0, 0])             # (C, C)

    # ---- channels-last, spatial flattened (lane-dense I/O, no in-kernel reshape) ----
    left_2d = jnp.transpose(left_nchw, (0, 2, 3, 1)).reshape(N, H * W, Cl)
    left_2d = left_2d.astype(jnp.bfloat16)                   # bf16 matmul input
    down_2d = jnp.transpose(down_nchw, (0, 2, 3, 1)).reshape(N, Hd * Wd, Cd)
    down_2d = down_2d.astype(jnp.float32)

    vec = lambda v: v.reshape(1, -1).astype(jnp.float32)
    Sd = Hd * Wd
    S = H * W
    TR = _pick_row_tile(S, max_rows)

    # ---- gate kernel: one tiny step per batch element ----
    gate = pl.pallas_call(
        ca_gate_kernel,
        out_shape=jax.ShapeDtypeStruct((N, 1, C), jnp.float32),
        grid=(N,),
        in_specs=[
            pl.BlockSpec((1, Sd, Cd), lambda n: (n, 0, 0)),
            pl.BlockSpec((Cd, C), lambda n: (0, 0)),
            pl.BlockSpec((1, C), lambda n: (0, 0)),
            pl.BlockSpec((C, C), lambda n: (0, 0)),
            pl.BlockSpec((1, C), lambda n: (0, 0)),
        ],
        out_specs=pl.BlockSpec((1, 1, C), lambda n: (n, 0, 0)),
        compiler_params=pltpu.CompilerParams(
            dimension_semantics=("parallel",)),
    )(down_2d, w1.astype(jnp.float32), vec(params["b1"]),
      w2.astype(jnp.float32), vec(params["b2"]))

    # ---- main kernel: conv0(+bn0)+relu and channel gating, row-tiled parallel grid ----
    out_2d = pl.pallas_call(
        ca_left_kernel,
        out_shape=jax.ShapeDtypeStruct((N, S, C), jnp.float32),
        grid=(N, S // TR),
        in_specs=[
            pl.BlockSpec((1, TR, Cl), lambda n, r: (n, r, 0)),
            pl.BlockSpec((Cl, C), lambda n, r: (0, 0)),
            pl.BlockSpec((1, C), lambda n, r: (0, 0)),
            pl.BlockSpec((1, 1, C), lambda n, r: (n, 0, 0)),
        ],
        out_specs=pl.BlockSpec((1, TR, C), lambda n, r: (n, r, 0)),
        compiler_params=pltpu.CompilerParams(
            dimension_semantics=("parallel", "parallel")),
    )(left_2d, w0_eff.astype(jnp.bfloat16), vec(b0_eff), gate)

    out = out_2d.reshape(N, H, W, C)
    return jnp.transpose(out, (0, 3, 1, 2))                  # back to NCHW


# ---------------- plain-JAX reference (NCHW, mirrors PyTorch, f32) ----------------
def ref_ca(left, down, params, eps=1e-5):
    w0 = params["w0"][:, :, 0, 0]                            # (C, Cl)
    h = jnp.einsum("nchw,oc->nohw", left, w0) + params["b0"][None, :, None, None]
    g, b, m, v = params["bn0"]
    h = (h - m[None, :, None, None]) * (g / jnp.sqrt(v + eps))[None, :, None, None] \
        + b[None, :, None, None]
    h = jax.nn.relu(h)

    d = down.mean(axis=(2, 3))                               # (N, Cd)
    d = jax.nn.relu(d @ params["w1"][:, :, 0, 0].T + params["b1"])
    d = jax.nn.sigmoid(d @ params["w2"][:, :, 0, 0].T + params["b2"])
    return h * d[:, :, None, None]


if __name__ == "__main__":
    # small shapes: batch=2, in_channel_left=32, in_channel_down=32,
    # left spatial 16x16, down spatial 8x8; module output channels fixed at 256.
    N = 2
    Cl, Cd = 32, 32
    H, W = 16, 16
    Hd, Wd = 8, 8
    C = 256

    key = jax.random.PRNGKey(0)
    ks = jax.random.split(key, 12)

    params = {
        "w0": 0.2 * jax.random.normal(ks[0], (C, Cl, 1, 1), jnp.float32),
        "b0": 0.1 * jax.random.normal(ks[1], (C,), jnp.float32),
        "w1": 0.2 * jax.random.normal(ks[2], (C, Cd, 1, 1), jnp.float32),
        "b1": 0.1 * jax.random.normal(ks[3], (C,), jnp.float32),
        "w2": 0.1 * jax.random.normal(ks[4], (C, C, 1, 1), jnp.float32),
        "b2": 0.1 * jax.random.normal(ks[5], (C,), jnp.float32),
        "bn0": (
            jax.random.uniform(ks[6], (C,), jnp.float32, 0.5, 1.5),   # gamma
            0.1 * jax.random.normal(ks[7], (C,), jnp.float32),        # beta
            0.1 * jax.random.normal(ks[8], (C,), jnp.float32),        # running mean
            jax.random.uniform(ks[9], (C,), jnp.float32, 0.5, 1.5),   # running var
        ),
    }
    left = jax.random.normal(ks[10], (N, Cl, H, W), jnp.float32)
    down = jax.random.normal(ks[11], (N, Cd, Hd, Wd), jnp.float32)

    out = jax.block_until_ready(ca_forward(left, down, params))
    ref = jax.block_until_ready(ref_ca(left, down, params))

    assert out.shape == ref.shape == (N, C, H, W)
    max_err = jnp.max(jnp.abs(out - ref))
    # bf16 matmul inputs (f32 accumulation) => looser tolerance than pure f32.
    assert jnp.allclose(out, ref, atol=3e-2, rtol=3e-2), f"max abs err {max_err}"

    print("KERNEL_OK")
</pallas_src>

<mosaic_0001>
module attributes {stable_mosaic.version = 11 : i64} {
  func.func @ca_gate_kernel(%arg0: i32, %arg1: memref<1x64x32xf32, #tpu.memory_space<vmem>>, %arg2: memref<32x256xf32, #tpu.memory_space<vmem>>, %arg3: memref<1x256xf32, #tpu.memory_space<vmem>>, %arg4: memref<256x256xf32, #tpu.memory_space<vmem>>, %arg5: memref<1x256xf32, #tpu.memory_space<vmem>>, %arg6: memref<1x1x256xf32, #tpu.memory_space<vmem>>) attributes {dimension_semantics = [#tpu.dimension_semantics<parallel>], iteration_bounds = array<i64: 2>, scalar_prefetch = 0 : i64, scratch_operands = 0 : i64, tpu.core_type = #tpu.core_type<tc>, window_params = [{transform_indices = @transform_0, window_bounds = array<i64: 1, 64, 32>}, {pipeline_mode = #tpu.pipeline_mode<synchronous>, transform_indices = @transform_1, window_bounds = array<i64: 32, 256>}, {pipeline_mode = #tpu.pipeline_mode<synchronous>, transform_indices = @transform_2, window_bounds = array<i64: 1, 256>}, {pipeline_mode = #tpu.pipeline_mode<synchronous>, transform_indices = @transform_3, window_bounds = array<i64: 256, 256>}, {pipeline_mode = #tpu.pipeline_mode<synchronous>, transform_indices = @transform_4, window_bounds = array<i64: 1, 256>}, {transform_indices = @transform_5, window_bounds = array<i64: 1, 1, 256>}]} {
    %c0 = arith.constant 0 : index
    %c0_0 = arith.constant 0 : index
    %c0_1 = arith.constant 0 : index
    %0 = vector.load %arg1[%c0, %c0_0, %c0_1] : memref<1x64x32xf32, #tpu.memory_space<vmem>>, vector<1x64x32xf32>
    %1 = vector.shape_cast %0 : vector<1x64x32xf32> to vector<64x32xf32>
    %cst = arith.constant dense<0.000000e+00> : vector<32xf32>
    %2 = vector.multi_reduction <add>, %1, %cst [0] : vector<64x32xf32> to vector<32xf32>
    %3 = vector.shape_cast %2 : vector<32xf32> to vector<1x32xf32>
    %cst_2 = arith.constant 6.400000e+01 : f32
    %4 = vector.broadcast %cst_2 : f32 to vector<1x32xf32>
    %5 = arith.divf %3, %4 : vector<1x32xf32>
    %6 = vector.shape_cast %5 : vector<1x32xf32> to vector<1x32xf32>
    %7 = vector.broadcast %6 : vector<1x32xf32> to vector<8x32xf32>
    %c0_3 = arith.constant 0 : index
    %c0_4 = arith.constant 0 : index
    %8 = vector.load %arg2[%c0_3, %c0_4] : memref<32x256xf32, #tpu.memory_space<vmem>>, vector<32x256xf32>
    %cst_5 = arith.constant dense<0.000000e+00> : vector<8x256xf32>
    %9 = tpu.matmul %7, %8, %cst_5 {dimension_numbers = #tpu.dot_dimension_numbers<[1], [0], [0], [1], [0, 0, 1, 1], [], []>} : vector<8x32xf32>, vector<32x256xf32>, vector<8x256xf32> -> vector<8x256xf32>
    %c0_6 = arith.constant 0 : index
    %c0_7 = arith.constant 0 : index
    %10 = vector.load %arg3[%c0_6, %c0_7] : memref<1x256xf32, #tpu.memory_space<vmem>>, vector<1x256xf32>
    %11 = vector.broadcast %10 : vector<1x256xf32> to vector<8x256xf32>
    %12 = arith.addf %9, %11 : vector<8x256xf32>
    %cst_8 = arith.constant 0.000000e+00 : f32
    %13 = vector.broadcast %cst_8 : f32 to vector<8x256xf32>
    %14 = arith.maximumf %12, %13 : vector<8x256xf32>
    %c0_9 = arith.constant 0 : index
    %c0_10 = arith.constant 0 : index
    %15 = vector.load %arg4[%c0_9, %c0_10] : memref<256x256xf32, #tpu.memory_space<vmem>>, vector<256x256xf32>
    %cst_11 = arith.constant dense<0.000000e+00> : vector<8x256xf32>
    %16 = tpu.matmul %14, %15, %cst_11 {dimension_numbers = #tpu.dot_dimension_numbers<[1], [0], [0], [1], [0, 0, 1, 1], [], []>} : vector<8x256xf32>, vector<256x256xf32>, vector<8x256xf32> -> vector<8x256xf32>
    %c0_12 = arith.constant 0 : index
    %c0_13 = arith.constant 0 : index
    %17 = vector.load %arg5[%c0_12, %c0_13] : memref<1x256xf32, #tpu.memory_space<vmem>>, vector<1x256xf32>
    %18 = vector.broadcast %17 : vector<1x256xf32> to vector<8x256xf32>
    %19 = arith.addf %16, %18 : vector<8x256xf32>
    %cst_14 = arith.constant 0.000000e+00 : f32
    %20 = vector.broadcast %cst_14 : f32 to vector<8x256xf32>
    %21 = arith.subf %20, %19 : vector<8x256xf32>
    %22 = math.exp %21 : vector<8x256xf32>
    %cst_15 = arith.constant 1.000000e+00 : f32
    %23 = vector.broadcast %cst_15 : f32 to vector<8x256xf32>
    %24 = arith.addf %23, %22 : vector<8x256xf32>
    %cst_16 = arith.constant 1.000000e+00 : f32
    %25 = vector.broadcast %cst_16 : f32 to vector<8x256xf32>
    %26 = arith.divf %25, %24 : vector<8x256xf32>
    %27 = vector.extract_strided_slice %26 {offsets = [0, 0], sizes = [1, 256], strides = [1, 1]} : vector<8x256xf32> to vector<1x256xf32>
    %c0_17 = arith.constant 0 : index
    %c0_18 = arith.constant 0 : index
    %c0_19 = arith.constant 0 : index
    %28 = vector.load %arg6[%c0_17, %c0_18, %c0_19] : memref<1x1x256xf32, #tpu.memory_space<vmem>>, vector<1x1x256xf32>
    %29 = vector.shape_cast %28 : vector<1x1x256xf32> to vector<1x256xf32>
    %30 = vector.shape_cast %27 : vector<1x256xf32> to vector<1x1x256xf32>
    tpu.vector_store %arg6[%c0_17, %c0_18, %c0_19], %30 {strides = array<i32>} : memref<1x1x256xf32, #tpu.memory_space<vmem>>, vector<1x1x256xf32>,
    return
  }
  func.func @transform_0(%arg0: i32) -> (i32, i32, i32) {
    %c0_i32 = arith.constant 0 : i32
    %c0_i32_0 = arith.constant 0 : i32
    %c0_i32_1 = arith.constant 0 : i32
    return %arg0, %c0_i32, %c0_i32_0 : i32, i32, i32
  }
  func.func @transform_1(%arg0: i32) -> (i32, i32) {
    %c0_i32 = arith.constant 0 : i32
    %c0_i32_0 = arith.constant 0 : i32
    %c0_i32_1 = arith.constant 0 : i32
    return %c0_i32, %c0_i32_0 : i32, i32
  }
  func.func @transform_2(%arg0: i32) -> (i32, i32) {
    %c0_i32 = arith.constant 0 : i32
    %c0_i32_0 = arith.constant 0 : i32
    %c0_i32_1 = arith.constant 0 : i32
    return %c0_i32, %c0_i32_0 : i32, i32
  }
  func.func @transform_3(%arg0: i32) -> (i32, i32) {
    %c0_i32 = arith.constant 0 : i32
    %c0_i32_0 = arith.constant 0 : i32
    %c0_i32_1 = arith.constant 0 : i32
    return %c0_i32, %c0_i32_0 : i32, i32
  }
  func.func @transform_4(%arg0: i32) -> (i32, i32) {
    %c0_i32 = arith.constant 0 : i32
    %c0_i32_0 = arith.constant 0 : i32
    %c0_i32_1 = arith.constant 0 : i32
    return %c0_i32, %c0_i32_0 : i32, i32
  }
  func.func @transform_5(%arg0: i32) -> (i32, i32, i32) {
    %c0_i32 = arith.constant 0 : i32
    %c0_i32_0 = arith.constant 0 : i32
    %c0_i32_1 = arith.constant 0 : i32
    return %arg0, %c0_i32, %c0_i32_0 : i32, i32, i32
  }
}

</mosaic_0001>

<bundles_post_ra>
// kernel: tpu_custom_call.1
= control target key start
LH: loop header
LB: loop body
LE: loop exit
PB: predicated region body
PF: predicated region fallthrough
CT: control target
= control target key end

     0   :  { %10 = vsyncpa [#allocation3], 0  ;;  %s996_s0 = inlined_call_operand.vmem [shape: f32[2,64,32], index: 0, kind: input, shape index: {}]   ;;  %s997_s1 = inlined_call_operand.vmem [shape: f32[32,256], index: 1, kind: input, shape index: {}]   ;;  %s998_s2 = inlined_call_operand.vmem [shape: f32[1,256], index: 2, kind: input, shape index: {}]   ;;  %s999_s3 = inlined_call_operand.hbm [shape: f32[256,256], index: 3, kind: input, shape index: {}]   ;;  %s1000_s4 = inlined_call_operand.vmem [shape: f32[1,256], index: 4, kind: input, shape index: {}]   ;;  %s1001_s5 = inlined_call_operand.hbm [shape: f32[2,1,256], index: 5, kind: output, shape index: {}]  }
   0x1   :  { %11 = vsyncpa [#allocation4], 0 }
   0x2   :  { %13 = vsyncpa [#allocation4 + $0x1], 0  ;;  %s834_s18 = smov 0   ;;  %s836_s19 = smov 0  }
   0x3   :  { %s838_s20 = smov 0   ;;  %s840_s21 = smov 0  }
   0x4 LB: > { %s855_s22 = sadd.s32 4294967295, %s798_s21   ;;  %s623_s23 = sadd.s32 4294967294, %s798_s21   ;;  %s798_s21 = sphi %s840_s21, %s1007_s21   ;;  %s794_s20 = sphi %s838_s20, %s1006_s20   ;;  %s790_s19 = sphi %s836_s19, %s1005_s19   ;;  %s786_s18 = sphi %s834_s18, %s1004_s18  }
   0x5   : > { %s859_s24 = sadd.s32 1, %s798_s21   ;;  %s136_s25 = sadd.s32 1, %s794_s20 }
   0x6   : > { %s133_s26 = ssub.s32 %s798_s21, %s859_s24  ;;  %p146_p0 = scmp.ne.s32.totalorder %s794_s20, %s790_s19 }
   0x7   : > { %p134_p1 = scmp.eq.s32.totalorder %s133_s26, 0  ;;  %p147_p2 = scmp.eq.s32.totalorder %s855_s22, 1 }
   0x8   : > { %p152_p3 = scmp.ne.s32.totalorder %s790_s19, %s786_s18  ;;  %p153_p4 = scmp.eq.s32.totalorder %s623_s23, 1 }
   0x9   : > { %s870_s27 = scalar_select %p134_p1, %s794_s20, %s136_s25  }
   0xa   : > { %p872_p5 = por %p147_p2, %p146_p0  ;;  %p876_p6 = por %p153_p4, %p152_p3 }
   0xb   : > { %p624_p7 = scmp.ge.s32.totalorder %s798_s21, 1  ;;  %p160_p8 = scmp.lt.s32.totalorder %s798_s21, 3 }
   0xc   : > { %p653_p9 = scmp.eq.s32.totalorder %s855_s22, 0  ;;  %s177_s7 = sshll.u32 %s999_s3, 4  ;;  %s178_s7 = int_to_ptr.hbm [resolvable:$true] %s177_s7 }
   0xd   : > { %p161_p10 = pnand %p624_p7, %p160_p8  ;;  %s800_s8 = smov [#allocation2]  }
   0xe   : > { %s179_s9 = sshll.u32 %s800_s8, 4  ;;  %s801_s10 = smov 256   ;;  %s180_s9 = int_to_ptr.vmem [resolvable:$true] %s179_s9 }
   0xf   : > { %p645_p11 = pneg %p161_p10  ;;  %s802_s11 = smov 16  }
  0x10   : > { %206 = sbr.rel (%p161_p10) target bundleno = 358 (0x166), region = 40 }
  0x11   : > { %p646_p12 = pnand %p653_p9, %p645_p11 }
  0x13   : > { %648 = dma.hbm_to_vmem [thread:$0]  (!%p646_p12), %s178_s7, 8192, %s180_s9, [#allocation3], %s801_s10, %s801_s10, %s802_s11  }
  0x15   : > { %777 = dma.done.wait (%p653_p9), [#allocation3], 8192  }
  0x16   : > { %779 = vsyncadd (%p653_p9), [#allocation3], 4294959104  ;;  %p235_p13 = scmp.lt.s32.totalorder %s855_s22, 1  ;;  %v284_v0 = vld [vmem:[%s997_s1 + $0x30] sm:$0xff]  ;;  %v282_v1 = vld [vmem:[%s997_s1 + $0x20] sm:$0xff]  ;;  %vm248_vm0 = vcmask 261120  }
  0x17   : > { %v285_v2 = vld [vmem:[%s997_s1 + $0x38] sm:$0xff]  ;;  %307 = vmatpush.msra.mxu0 %v284_v0  ;;  %v280_v3 = vld [vmem:[%s997_s1 + $0x10] sm:$0xff]  ;;  %v283_v4 = vld [vmem:[%s997_s1 + $0x28] sm:$0xff]  ;;  %v803_v8 = vmov 64.0   ;;  %s232_s30 = sand.u32 1, %s790_s19   ;;  %s635_s7 = sshll.u32 %s855_s22, 1 }
  0x18   : > { %s236_s12 = scalar_select %p235_p13, %s855_s22, 1  ;;  %327 = vmatpush.msra.mxu1 %v285_v2  ;;  %v281_v5 = vld [vmem:[%s997_s1 + $0x18] sm:$0xff]  ;;  %692 = vrcp.f32 %v803_v8  ;;  %v278_v13 = vld [vmem:[%s997_s1] sm:$0xff]  ;;  %v279_v18 = vld [vmem:[%s997_s1 + $0x8] sm:$0xff]  ;;  %vm528_vm9 = vcmask 1040384  }
  0x19   : > { %308 = vmatpush.msra.mxu0 %v282_v1  ;;  %v367_v19 = vld [vmem:[#allocation2 + $0xf0] sm:$0xff]  ;;  %v368_v20 = vld [vmem:[#allocation2 + $0xf8] sm:$0xff]  ;;  %v365_v23 = vld [vmem:[#allocation2 + $0xe0] sm:$0xff]  ;;  %s957_s6 = sshll.u32 %s232_s30, 1  ;;  %s547_s10 = scalar_lea.hbm %s1001_s5, %s635_s7 }
  0x1a   : > { %s638_s13 = sshll.u32 %s236_s12, 6  ;;  %328 = vmatpush.msra.mxu1 %v283_v4  ;;  %407 = vmatpush.msra.mxu2 %v367_v19  ;;  %v399_v24 = vld [vmem:[#allocation2 + $0x1f0] sm:$0xff]  ;;  %v366_v26 = vld [vmem:[#allocation2 + $0xe8] sm:$0xff]  ;;  %v400_v27 = vld [vmem:[#allocation2 + $0x1f8] sm:$0xff]  ;;  %s234_s11 = scalar_lea.vmem [#allocation5], %s957_s6 }
  0x1b   : > { %s897_s16 = scalar_lea.vmem %s996_s0, %s638_s13  ;;  %309 = vmatpush.msra.mxu0 %v280_v3  ;;  %v363_v28 = vld [vmem:[#allocation2 + $0xd0] sm:$0xff]  ;;  %v397_v32 = vld [vmem:[#allocation2 + $0x1e0] sm:$0xff]  ;;  %v398_v33 = vld [vmem:[#allocation2 + $0x1e8] sm:$0xff]  ;;  %427 = vmatpush.msra.mxu3 %v399_v24  ;;  %s964_s22 = sshll.u32 %s234_s11, 4  ;;  %s550_s22 = int_to_ptr.vmem [resolvable:$true] %s964_s22 }
  0x1c   : > { %v240_v6 = vld [vmem:[%s897_s16] sm:$0xff]  ;;  %v241_v7 = vld [vmem:[%s897_s16 + $0x8] sm:$0xff]  ;;  %v242_v9 = vld [vmem:[%s897_s16 + $0x10] sm:$0xff]  ;;  %329 = vmatpush.msra.mxu1 %v281_v5  ;;  %408 = vmatpush.msra.mxu2 %v365_v23  ;;  %s551_s12 = sshll.u32 %s547_s10, 4  ;;  %s537_s13 = scalar_lea.sflag [#allocation4], %s232_s30  ;;  %s552_s12 = int_to_ptr.hbm [resolvable:$true] %s551_s12 }
  0x1d   : > { %v243_v10 = vld [vmem:[%s897_s16 + $0x18] sm:$0xff]  ;;  %v249_v11 = vsel %vm248_vm0, %v240_v6, 0.0  ;;  %v250_v12 = vsel %vm248_vm0, %v241_v7, 0.0  ;;  %v244_v14 = vld [vmem:[%s897_s16 + $0x20] sm:$0xff]  ;;  %v252_v16 = vsel %vm248_vm0, %v242_v9, 0.0  ;;  %v245_v21 = vld [vmem:[%s897_s16 + $0x28] sm:$0xff]  ;;  %310 = vmatpush.msra.mxu0 %v278_v13  ;;  %428 = vmatpush.msra.mxu3 %v397_v32 }
  0x1e   : > { %v251_v15 = vadd.f32 %v250_v12, %v249_v11  ;;  %v254_v17 = vsel %vm248_vm0, %v243_v10, 0.0  ;;  %v256_v25 = vsel %vm248_vm0, %v244_v14, 0.0  ;;  %330 = vmatpush.msra.mxu1 %v279_v18  ;;  %v934_v29 = vpop.eup %692  ;;  %v246_v30 = vld [vmem:[%s897_s16 + $0x30] sm:$0xff]  ;;  %v258_v34 = vsel %vm248_vm0, %v245_v21, 0.0  ;;  %v364_v35 = vld [vmem:[#allocation2 + $0xd8] sm:$0xff]  ;;  %v361_v36 = vld [vmem:[#allocation2 + $0xc0] sm:$0xff]  ;;  %409 = vmatpush.msra.mxu2 %v363_v28 }
  0x1f   : > { %447 = vmatpush.msrb.mxu0 %v368_v20  ;;  %v247_v37 = vld [vmem:[%s897_s16 + $0x38] sm:$0xff]  ;;  %v395_v39 = vld [vmem:[#allocation2 + $0x1d0] sm:$0xff]  ;;  %v260_v41 = vsel %vm248_vm0, %v246_v30, 0.0  ;;  %v271_v42 = vmul.f32 64.0, %v934_v29  ;;  %v362_v43 = vld [vmem:[#allocation2 + $0xc8] sm:$0xff]  ;;  %vm275_vm1 = vweird.f32 %v934_v29  ;;  %s746_s14 = sshra.s32 %s552_s12, 4  ;;  %s747_s14 = int_to_ptr.hbm [resolvable:$true] %s746_s14 }
  0x20   : > { %v253_v22 = vadd.f32 %v252_v16, %v251_v15  ;;  %467 = vmatpush.msrb.mxu1 %v400_v27  ;;  %v396_v40 = vld [vmem:[#allocation2 + $0x1d8] sm:$0xff]  ;;  %v359_v44 = vld [vmem:[#allocation2 + $0xb0] sm:$0xff]  ;;  %410 = vmatpush.msra.mxu2 %v361_v36  ;;  %v393_v46 = vld [vmem:[#allocation2 + $0x1c0] sm:$0xff]  ;;  %v262_v48 = vsel %vm248_vm0, %v247_v37, 0.0  ;;  %s748_s15 = scalar_lea.hbm %s747_s14, 2  ;;  %s752_s23 = scalar_lea.hbm %s1001_s5, 4 }
  0x21   : > { %448 = vmatpush.msrb.mxu0 %v366_v26  ;;  %v394_v47 = vld [vmem:[#allocation2 + $0x1c8] sm:$0xff]  ;;  %429 = vmatpush.msra.mxu3 %v395_v39  ;;  %v360_v49 = vld [vmem:[#allocation2 + $0xb8] sm:$0xff]  ;;  %v357_v50 = vld [vmem:[#allocation2 + $0xa0] sm:$0xff]  ;;  %v272_v54 = vsub.f32 1.0, %v271_v42  ;;  %p749_p0 = scmp.ne.s32.totalorder %s747_s14, %s748_s15  ;;  %p753_p3 = scmp.lt.s32.totalorder %s747_s14, %s1001_s5 }
  0x22   : > { %v255_v31 = vadd.f32 %v254_v17, %v253_v22  ;;  %468 = vmatpush.msrb.mxu1 %v398_v33  ;;  %411 = vmatpush.msra.mxu2 %v359_v44  ;;  %v391_v52 = vld [vmem:[#allocation2 + $0x1b0] sm:$0xff]  ;;  %v392_v53 = vld [vmem:[#allocation2 + $0x1b8] sm:$0xff]  ;;  %v358_v55 = vld [vmem:[#allocation2 + $0xa8] sm:$0xff]  ;;  %p754_p4 = scmp.lt.s32.totalorder %s752_s23, %s748_s15 }
  0x23   : > { %449 = vmatpush.msrb.mxu0 %v364_v35  ;;  %430 = vmatpush.msra.mxu3 %v393_v46  ;;  %v355_v56 = vld [vmem:[#allocation2 + $0x90] sm:$0xff]  ;;  %v389_v58 = vld [vmem:[#allocation2 + $0x1a0] sm:$0xff]  ;;  %v390_v59 = vld [vmem:[#allocation2 + $0x1a8] sm:$0xff]  ;;  %v273_v1 = vmul.f32 %v934_v29, %v272_v54  ;;  %p750_p1 = pnand %p749_p0, %p872_p5 }
  0x24   : > { %v257_v38 = vadd.f32 %v256_v25, %v255_v31  ;;  %469 = vmatpush.msrb.mxu1 %v396_v40  ;;  %412 = vmatpush.msra.mxu2 %v357_v50  ;;  %v356_v60 = vld [vmem:[#allocation2 + $0x98] sm:$0xff]  ;;  %v353_v61 = vld [vmem:[#allocation2 + $0x80] sm:$0xff]  ;;  %v387_v63 = vld [vmem:[#allocation2 + $0x190] sm:$0xff]  ;;  %p755_p7 = por %p754_p4, %p753_p3 }
  0x25   : > { %450 = vmatpush.msrb.mxu0 %v362_v43  ;;  %431 = vmatpush.msra.mxu3 %v391_v52  ;;  %v388_v0 = vld [vmem:[#allocation2 + $0x198] sm:$0xff]  ;;  %v354_v2 = vld [vmem:[#allocation2 + $0x88] sm:$0xff]  ;;  %v351_v3 = vld [vmem:[#allocation2 + $0x70] sm:$0xff]  ;;  %v274_v12 = vadd.f32 %v934_v29, %v273_v1  ;;  %p751_p2 = pneg %p750_p1 }
  0x26   : > { %v259_v45 = vadd.f32 %v258_v34, %v257_v38  ;;  %470 = vmatpush.msrb.mxu1 %v394_v47  ;;  %413 = vmatpush.msra.mxu2 %v355_v56  ;;  %v385_v5 = vld [vmem:[#allocation2 + $0x180] sm:$0xff]  ;;  %v386_v6 = vld [vmem:[#allocation2 + $0x188] sm:$0xff]  ;;  %v352_v7 = vld [vmem:[#allocation2 + $0x78] sm:$0xff] }
  0x27   : > { %451 = vmatpush.msrb.mxu0 %v360_v49  ;;  %432 = vmatpush.msra.mxu3 %v389_v58  ;;  %v349_v8 = vld [vmem:[#allocation2 + $0x60] sm:$0xff]  ;;  %v383_v10 = vld [vmem:[#allocation2 + $0x170] sm:$0xff]  ;;  %v384_v11 = vld [vmem:[#allocation2 + $0x178] sm:$0xff]  ;;  %v276_v23 = vsel %vm275_vm1, %v934_v29, %v274_v12  ;;  %p756_p8 = pnand %p755_p7, %p751_p2 }
  0x28   : > { %v261_v51 = vadd.f32 %v260_v41, %v259_v45  ;;  %471 = vmatpush.msrb.mxu1 %v392_v53  ;;  %414 = vmatpush.msra.mxu2 %v353_v61  ;;  %v350_v13 = vld [vmem:[#allocation2 + $0x68] sm:$0xff]  ;;  %v347_v14 = vld [vmem:[#allocation2 + $0x50] sm:$0xff]  ;;  %v381_v16 = vld [vmem:[#allocation2 + $0x160] sm:$0xff] }
  0x29   : > { %452 = vmatpush.msrb.mxu0 %v358_v55  ;;  %433 = vmatpush.msra.mxu3 %v387_v63  ;;  %v382_v17 = vld [vmem:[#allocation2 + $0x168] sm:$0xff]  ;;  %v348_v18 = vld [vmem:[#allocation2 + $0x58] sm:$0xff]  ;;  %v345_v19 = vld [vmem:[#allocation2 + $0x40] sm:$0xff] }
  0x2a   : > { %v263_v57 = vadd.f32 %v262_v48, %v261_v51  ;;  %472 = vmatpush.msrb.mxu1 %v390_v59  ;;  %415 = vmatpush.msra.mxu2 %v351_v3  ;;  %v379_v21 = vld [vmem:[#allocation2 + $0x150] sm:$0xff]  ;;  %v380_v22 = vld [vmem:[#allocation2 + $0x158] sm:$0xff]  ;;  %v346_v24 = vld [vmem:[#allocation2 + $0x48] sm:$0xff] }
  0x2b   : > { %453 = vmatpush.msrb.mxu0 %v356_v60  ;;  %434 = vmatpush.msra.mxu3 %v385_v5  ;;  %v343_v25 = vld [vmem:[#allocation2 + $0x30] sm:$0xff]  ;;  %v377_v27 = vld [vmem:[#allocation2 + $0x140] sm:$0xff]  ;;  %v378_v28 = vld [vmem:[#allocation2 + $0x148] sm:$0xff] }
  0x2c   : > { %v264_v62 = vrot.slane %v263_v57, 4  ;;  %473 = vmatpush.msrb.mxu1 %v388_v0  ;;  %416 = vmatpush.msra.mxu2 %v349_v8  ;;  %v344_v31 = vld [vmem:[#allocation2 + $0x38] sm:$0xff]  ;;  %v341_v29 = vld [vmem:[#allocation2 + $0x20] sm:$0xff]  ;;  %v375_v32 = vld [vmem:[#allocation2 + $0x130] sm:$0xff] }
  0x2d   : > { %454 = vmatpush.msrb.mxu0 %v354_v2  ;;  %435 = vmatpush.msra.mxu3 %v383_v10  ;;  %v342_v33 = vld [vmem:[#allocation2 + $0x28] sm:$0xff]  ;;  %v376_v34 = vld [vmem:[#allocation2 + $0x138] sm:$0xff]  ;;  %v339_v35 = vld [vmem:[#allocation2 + $0x10] sm:$0xff] }
  0x2e   : > { %v265_v4 = vadd.f32 %v264_v62, %v263_v57  ;;  %474 = vmatpush.msrb.mxu1 %v386_v6  ;;  %417 = vmatpush.msra.mxu2 %v347_v14  ;;  %v373_v36 = vld [vmem:[#allocation2 + $0x120] sm:$0xff]  ;;  %v340_v37 = vld [vmem:[#allocation2 + $0x18] sm:$0xff]  ;;  %v374_v38 = vld [vmem:[#allocation2 + $0x128] sm:$0xff] }
  0x2f   : > { %455 = vmatpush.msrb.mxu0 %v352_v7  ;;  %436 = vmatpush.msra.mxu3 %v381_v16  ;;  %v337_v39 = vld [vmem:[#allocation2] sm:$0xff]  ;;  %v371_v40 = vld [vmem:[#allocation2 + $0x110] sm:$0xff]  ;;  %v338_v41 = vld [vmem:[#allocation2 + $0x8] sm:$0xff] }
  0x30   : > { %v266_v9 = vrot.slane %v265_v4, 2  ;;  %475 = vmatpush.msrb.mxu1 %v384_v11  ;;  %418 = vmatpush.msra.mxu2 %v345_v19  ;;  %v372_v42 = vld [vmem:[#allocation2 + $0x118] sm:$0xff]  ;;  %v369_v43 = vld [vmem:[#allocation2 + $0x100] sm:$0xff]  ;;  %v370_v44 = vld [vmem:[#allocation2 + $0x108] sm:$0xff] }
  0x31   : > { %456 = vmatpush.msrb.mxu0 %v350_v13  ;;  %437 = vmatpush.msra.mxu3 %v379_v21  ;;  %v286_v45 = vld [vmem:[%s998_s2] sm:$0x3] }
  0x32   : > { %v267_v15 = vadd.f32 %v266_v9, %v265_v4  ;;  %476 = vmatpush.msrb.mxu1 %v382_v17  ;;  %419 = vmatpush.msra.mxu2 %v343_v25  ;;  %v288_v46 = vperm.slane %v286_v45, 0  ;;  %v289_v47 = vperm.slane %v286_v45, 1  ;;  %v401_v54 = vld [vmem:[%s1000_s4] sm:$0x3] }
  0x33   : > { %457 = vmatpush.msrb.mxu0 %v348_v18  ;;  %438 = vmatpush.msra.mxu3 %v377_v27  ;;  %v404_v55 = vperm.slane %v401_v54, 1  ;;  %v403_v60 = vperm.slane %v401_v54, 0 }
  0x34   : > { %v268_v20 = vrot.slane %v267_v15, 1  ;;  %477 = vmatpush.msrb.mxu1 %v380_v22  ;;  %420 = vmatpush.msra.mxu2 %v341_v29  ;;  %v531_v22 = vlaneseq }
  0x35   : > { %458 = vmatpush.msrb.mxu0 %v346_v24  ;;  %439 = vmatpush.msra.mxu3 %v375_v32 }
  0x36   : > { %v269_v26 = vadd.f32 %v268_v20, %v267_v15  ;;  %478 = vmatpush.msrb.mxu1 %v378_v28  ;;  %421 = vmatpush.msra.mxu2 %v339_v35  ;;  %vm533_vm11 = vcmp.lt.s32.totalorder %v531_v22, 256 }
  0x37   : > { %459 = vmatpush.msrb.mxu0 %v344_v31  ;;  %440 = vmatpush.msra.mxu3 %v373_v36 }
  0x38   : > { %v277_v30 = vmul.f32 %v276_v23, %v269_v26  ;;  %479 = vmatpush.msrb.mxu1 %v376_v34  ;;  %422 = vmatpush.msra.mxu2 %v337_v39 }
  0x39   : > { %460 = vmatpush.msrb.mxu0 %v342_v33  ;;  %441 = vmatpush.msra.mxu3 %v371_v40 }
  0x3a   : > { %632 = vmatmul.msk.f32.vlgmr.msra.gmra.mxu0 %vm248_vm0, %v277_v30  ;;  %633 = vmatmul.msk.f32.vlgmr.msra.gmra.mxu1 %vm248_vm0, %v277_v30 }
  0x3b   : > { %461 = vmatpush.msrb.mxu0 %v340_v37  ;;  %480 = vmatpush.msrb.mxu1 %v374_v38 }
  0x3c   : > { %442 = vmatpush.msra.mxu3 %v369_v43 }
  0x3d   : > { %462 = vmatpush.msrb.mxu0 %v338_v41  ;;  %481 = vmatpush.msrb.mxu1 %v372_v42 }
  0x3f   : > { %482 = vmatpush.msrb.mxu1 %v370_v44 }
  0xb7   : > { %v312_v48 = vpop.f32.mrf.mxu0  ;;  %v332_v49 = vpop.f32.mrf.mxu1 }
  0xb8   : > { %v313_v50 = vadd.f32 %v312_v48, %v288_v46  ;;  %v333_v51 = vadd.f32 %v332_v49, %v289_v47 }
  0xba   : > { %v335_v52 = vmax.f32 %v313_v50, 0.0  ;;  %v336_v53 = vmax.f32 %v333_v51, 0.0 }
  0xbc   : > { %423 = vmatmul.f32.vlgmr.msra.gmra.mxu2 %v335_v52  ;;  %463 = vmatmul.f32.vlgmr.msrb.gmra.mxu0 %v335_v52 }
  0xbd   : > { %443 = vmatmul.f32.vlgmr.msra.gmra.mxu3 %v336_v53  ;;  %483 = vmatmul.f32.vlgmr.msrb.gmra.mxu1 %v336_v53 }
 0x139   : > { %v464_v56 = vpop.f32.mrf.mxu0 }
 0x13a   : > { %v465_v57 = vadd.f32 %v464_v56, %v404_v55  ;;  %v484_v58 = vpop.f32.mrf.mxu1 }
 0x13c   : > { %v485_v59 = vadd.f32 %v484_v58, %v465_v57 }
 0x13e   : > { %v488_v61 = vsub.f32 0.0, %v485_v59 }
 0x13f   : > { %v424_v62 = vpop.f32.mrf.mxu2 }
 0x140   : > { %v491_v63 = vmul.f32 1.442695, %v488_v61  ;;  %v425_v0 = vadd.f32 %v424_v62, %v403_v60  ;;  %v444_v1 = vpop.f32.mrf.mxu3 }
 0x142   : > { %694 = vpow2.f32 %v491_v63  ;;  %v445_v2 = vadd.f32 %v444_v1, %v425_v0 }
 0x144   : > { %v487_v3 = vsub.f32 0.0, %v445_v2 }
 0x146   : > { %v489_v4 = vmul.f32 1.442695, %v487_v3 }
 0x148   : > { %v695_v5 = vpop.eup %694  ;;  %696 = vpow2.f32 %v489_v4 }
 0x149   : > { %v494_v6 = vadd.f32 1.0, %v695_v5 }
 0x14b   : > { %698 = vrcp.f32 %v494_v6  ;;  %v521_v14 = vand.u32 2147483648, %v494_v6  ;;  %vm515_vm3 = vweird.f32 %v494_v6  ;;  %v519_v16 = vand.u32 2147483647, %v494_v6 }
 0x14d   : > { %v522_v20 = vor.u32 1.1754944e-38, %v521_v14  ;;  %vm520_vm6 = vcmp.eq.f32.partialorder %v519_v16, 8.507059e+37 }
 0x14e   : > { %v697_v7 = vpop.eup %696 }
 0x14f   : > { %v493_v8 = vadd.f32 1.0, %v697_v7 }
 0x151   : > { %v699_v9 = vpop.eup %698  ;;  %700 = vrcp.f32 %v493_v8  ;;  %v506_v21 = vand.u32 2147483648, %v493_v8  ;;  %v504_v24 = vand.u32 2147483647, %v493_v8  ;;  %vm500_vm7 = vweird.f32 %v493_v8 }
 0x152   : > { %v511_v10 = vmul.f32 %v699_v9, %v494_v6  ;;  %vm516_vm2 = vweird.f32 %v699_v9 }
 0x153   : > { %vm517_vm4 = vmor %vm515_vm3, %vm516_vm2  ;;  %v507_v27 = vor.u32 1.1754944e-38, %v506_v21  ;;  %vm505_vm10 = vcmp.eq.f32.partialorder %v504_v24, 8.507059e+37 }
 0x154   : > { %v512_v11 = vsub.f32 1.0, %v511_v10 }
 0x156   : > { %v513_v12 = vmul.f32 %v699_v9, %v512_v11 }
 0x157   : > { %v701_v13 = vpop.eup %700 }
 0x158   : > { %v514_v15 = vadd.f32 %v699_v9, %v513_v12  ;;  %v496_v17 = vmul.f32 %v701_v13, %v493_v8  ;;  %vm501_vm5 = vweird.f32 %v701_v13 }
 0x159   : > { %vm502_vm8 = vmor %vm500_vm7, %vm501_vm5 }
 0x15a   : > { %v497_v18 = vsub.f32 1.0, %v496_v17  ;;  %v518_v19 = vsel %vm517_vm4, %v699_v9, %v514_v15 }
 0x15b   : > { %v523_v25 = vsel %vm520_vm6, %v522_v20, %v518_v19 }
 0x15c   : > { %v498_v23 = vmul.f32 %v701_v13, %v497_v18  ;;  %v527_v30 = vrot.slane %v523_v25, 7 }
 0x15e   : > { %v499_v26 = vadd.f32 %v701_v13, %v498_v23 }
 0x160   : > { %v503_v28 = vsel %vm502_vm8, %v701_v13, %v499_v26 }
 0x161   : > { %v508_v31 = vsel %vm505_vm10, %v507_v27, %v503_v28 }
 0x162   : > { %v529_v29 = vsel %vm528_vm9, %v508_v31, %v527_v30 }
 0x163   : > { %535 = vst.msk [vmem:[%s234_s11] sm:$0x3] %vm533_vm11, %v529_v29 }
 0x164   : > { %759 = shalt.err (!%p756_p8)
}
 0x165   : > { %643 = dma.vmem_to_hbm [thread:$0]  (%p872_p5), %s550_s22, 32, %s552_s12, %s537_s13  }
 0x166 PF: > { %p655_p9 = scmp.ge.s32.totalorder %s798_s21, 2  ;;  %s563_s30 = sand.u32 1, %s786_s18  }
 0x167   : > { %s564_s6 = scalar_lea.sflag [#allocation4], %s563_s30 }
 0x168   : > { %p650_p10 = pnand %p655_p9, %p876_p6 }
 0x16a   : > { %p651_p11 = pneg %p650_p10 }
 0x16c   : > { %781 = dma.done.wait (%p651_p11), %s564_s6, 32  }
 0x16d   : > { %783 = vsyncadd (%p651_p11), %s564_s6, 4294967264  ;;  %p16_p12 = scmp.ge.s32.totalorder %s859_s24, 4   ;;  %s1004_s18 = smov %s790_s19 }
 0x16e   : > { %s1005_s19 = smov %s794_s20  ;;  %s1006_s20 = smov %s870_s27 }
 0x16f   : > { %s1007_s21 = smov %s859_s24  ;;  %18 = sbr.rel (!%p16_p12) target bundleno = 4 (0x4), region = 80 }
 0x174   :  { %570 = vsyncpa [#allocation3], 1 }
 0x175   :  { %572 = vsyncpa [#allocation3 + $0x1], 1 }
 0x176   :  { %573 = vsyncpa [#allocation4], 1 }
 0x177   :  { %575 = vsyncpa [#allocation4 + $0x1], 1 }

</bundles_post_ra>
